<compile_context>
chip_gen: v7x
topology: tpu7x:2x2x1
jax: 0.10.0
libtpu: 0.0.40
codegen_flags: <defaults>
</compile_context>

<pallas_src>
import functools

import jax
import jax.numpy as jnp
from jax import lax
from jax.experimental import pallas as pl
from jax.experimental.pallas import tpu as pltpu


def _convembed_kernel(p_ref, w_ref, b_ref, g_ref, beta_ref, o_ref, *,
                      use_norm, eps, inv_c):
    # p_ref: (1, K_sub, TM)   w_ref: (Cout, K_sub)   b/g/beta: (Cout, 1)   o_ref: (1, Cout, TM)
    acc = jnp.dot(w_ref[...], p_ref[0], preferred_element_type=jnp.float32)   # MXU, f32 acc
    acc = acc + b_ref[...].astype(jnp.float32)                                # lane-broadcast bias
    if use_norm:
        # LayerNorm over the channel (sublane) axis; one-pass E[x], E[x^2] in f32.
        mean = jnp.sum(acc, axis=0, keepdims=True) * inv_c                    # (1, TM)
        msq = jnp.sum(acc * acc, axis=0, keepdims=True) * inv_c               # (1, TM)
        var = jnp.maximum(msq - mean * mean, 0.0)
        acc = (acc - mean) * lax.rsqrt(var + eps)
        acc = acc * g_ref[...].astype(jnp.float32) + beta_ref[...].astype(jnp.float32)
    o_ref[0] = acc.astype(o_ref.dtype)


def conv_embed_forward(x, weight, bias, gamma=None, beta=None, *,
                       stride, padding, eps=1e-5, tm=None,
                       matmul_dtype=jnp.bfloat16, out_dtype=None):
    """ConvEmbed.forward.  x: (B, Cin, H, W) NCHW.  weight: (Cout, Cin, kh, kw)."""
    B, Cin, H, W = x.shape
    Cout, Cin_w, kh, kw = weight.shape
    assert Cin == Cin_w
    s, p = stride, padding
    Hout = (H + 2 * p - kh) // s + 1
    Wout = (W + 2 * p - kw) // s + 1
    HW = Hout * Wout
    K = Cin * kh * kw

    in_dtype = x.dtype
    out_dtype = in_dtype if out_dtype is None else jnp.dtype(out_dtype)
    mm_dtype = jnp.dtype(in_dtype) if matmul_dtype is None else jnp.dtype(matmul_dtype)

    # Cast BEFORE building im2col: the materialized patch array is the dominant HBM stream.
    x = x.astype(mm_dtype)
    weight = weight.astype(mm_dtype)

    # K only needs sublane alignment (the lane dim of the block is TM).
    sub = 16 if mm_dtype.itemsize == 2 else 8
    K_sub = ((K + sub - 1) // sub) * sub

    # Tiny feature maps: fold batch into the lane dim (lane-dense stores, full MXU N).
    fold_batch = (HW < 128) and (B > 1)
    M_total = B * HW if fold_batch else HW
    n_b = 1 if fold_batch else B

    # ---- glue: im2col via cheap strided slices; K ordered (Cin, kh, kw) = Conv2d weight order.
    xp = jnp.pad(x, ((0, 0), (0, 0), (p, p), (p, p)))
    cols = []
    for i in range(kh):
        for j in range(kw):
            sl = lax.slice(
                xp, (0, 0, i, j),
                (B, Cin, i + s * (Hout - 1) + 1, j + s * (Wout - 1) + 1),
                (1, 1, s, s))                                    # (B, Cin, Hout, Wout)
            if fold_batch:
                sl = jnp.transpose(sl, (1, 0, 2, 3))             # (Cin, B, Hout, Wout)
                cols.append(sl.reshape(Cin, 1, M_total))
            else:
                cols.append(sl.reshape(B, Cin, 1, HW))
    if fold_batch:
        patches = jnp.concatenate(cols, axis=1).reshape(1, K, M_total)
    else:
        patches = jnp.concatenate(cols, axis=2).reshape(B, K, HW)
    if K_sub != K:
        patches = jnp.concatenate(
            [patches, jnp.zeros((n_b, K_sub - K, M_total), patches.dtype)], axis=1)

    w2 = weight.reshape(Cout, K)
    if K_sub != K:
        w2 = jnp.pad(w2, ((0, 0), (0, K_sub - K)))               # zero weight rows -> exact
    b2 = bias.reshape(Cout, 1).astype(jnp.float32)
    use_norm = gamma is not None
    g2 = (gamma if use_norm else jnp.ones((Cout,), jnp.float32)).reshape(Cout, 1).astype(jnp.float32)
    be2 = (beta if use_norm else jnp.zeros((Cout,), jnp.float32)).reshape(Cout, 1).astype(jnp.float32)

    # ---- generation-aware tiling / VMEM limit ----
    vmem_cap = 128 << 20
    try:
        vmem_cap = int(pltpu.get_tpu_info().vmem_capacity_bytes)
    except Exception:
        pass
    vmem_limit = int(min(vmem_cap * 3 // 4, 112 << 20))
    budget = vmem_limit * 3 // 5

    p_bytes = mm_dtype.itemsize
    o_bytes = jnp.dtype(out_dtype).itemsize
    if tm is None:
        per_lane = 2 * K_sub * p_bytes + 2 * Cout * o_bytes       # double-buffered in/out
        fixed = 2 * Cout * K_sub * p_bytes + 8 * Cout * 4         # resident weight + vectors
        fit = max(budget - fixed, 0) // per_lane
        TM = int(max(128, min(2048, (fit // 128) * 128)))
        if TM >= M_total:
            TM = M_total                                          # single full-extent block
    else:
        TM = min(tm, M_total)
    n_t = pl.cdiv(M_total, TM)

    # Larger parallel axis first -> balanced megacore split on v7x.
    if n_t >= n_b:
        grid = (n_t, n_b)
        po_map = lambda t, b: (b, 0, t)
    else:
        grid = (n_b, n_t)
        po_map = lambda b, t: (b, 0, t)
    const_map = lambda *_: (0, 0)

    kernel = functools.partial(_convembed_kernel, use_norm=use_norm,
                               eps=float(eps), inv_c=1.0 / Cout)
    out = pl.pallas_call(
        kernel,
        out_shape=jax.ShapeDtypeStruct((n_b, Cout, M_total), out_dtype),
        grid=grid,
        in_specs=[
            pl.BlockSpec((1, K_sub, TM), po_map),
            pl.BlockSpec((Cout, K_sub), const_map),
            pl.BlockSpec((Cout, 1), const_map),
            pl.BlockSpec((Cout, 1), const_map),
            pl.BlockSpec((Cout, 1), const_map),
        ],
        out_specs=pl.BlockSpec((1, Cout, TM), po_map),
        compiler_params=pltpu.CompilerParams(
            dimension_semantics=("parallel", "parallel"),
            vmem_limit_bytes=vmem_limit),
        cost_estimate=pl.CostEstimate(
            flops=2 * n_b * M_total * K_sub * Cout,
            transcendentals=(n_b * M_total if use_norm else 0),
            bytes_accessed=(patches.size * patches.dtype.itemsize
                            + w2.size * w2.dtype.itemsize
                            + n_b * Cout * M_total * o_bytes)),
    )(patches, w2, b2, g2, be2)

    if fold_batch:
        # (1, Cout, B*HW) -> (B, Cout, Hout, Wout); tiny transpose, only for small feature maps.
        return out.reshape(Cout, B, Hout, Wout).transpose(1, 0, 2, 3)
    # Already 'b c (h w)': free reshape to NCHW, no trailing transpose pass.
    return out.reshape(B, Cout, Hout, Wout)


if __name__ == "__main__":
    # Shapes consistent with ConvEmbed(patch_size=7, stride=4, padding=2).
    B, Cin, H, W = 2, 4, 16, 16
    Cout = 32          # embed_dim
    kh = kw = 7
    stride, padding = 4, 2

    key = jax.random.PRNGKey(0)
    kx, kw_, kb, kg, kbe, kx2 = jax.random.split(key, 6)
    x = jax.random.normal(kx, (B, Cin, H, W), jnp.float32)

    fan_in = Cin * kh * kw
    bound = 1.0 / (fan_in ** 0.5)
    weight = jax.random.uniform(kw_, (Cout, Cin, kh, kw), jnp.float32, -bound, bound)
    bias = jax.random.uniform(kb, (Cout,), jnp.float32, -bound, bound)
    gamma = jax.random.uniform(kg, (Cout,), jnp.float32, 0.5, 1.5)   # LayerNorm weight
    beta = jax.random.uniform(kbe, (Cout,), jnp.float32, -0.5, 0.5)  # LayerNorm bias

    def conv_ref(xi, wi, bi, op_dtype):
        y = lax.conv_general_dilated(
            xi.astype(op_dtype), wi.astype(op_dtype),
            window_strides=(stride, stride),
            padding=[(padding, padding), (padding, padding)],
            dimension_numbers=("NCHW", "OIHW", "NCHW"),
            preferred_element_type=jnp.float32)
        return y + bi.reshape(1, -1, 1, 1)

    # 1) Default module config (norm_layer=None), default bf16 streamed operands.
    y_plain = conv_embed_forward(x, weight, bias, stride=stride, padding=padding)
    jax.block_until_ready(y_plain)
    y_ref = conv_ref(x, weight, bias, jnp.bfloat16)
    assert y_plain.shape == y_ref.shape == (B, Cout, 4, 4)
    assert float(jnp.max(jnp.abs(y_plain - y_ref))) < 2e-2

    # 2) norm_layer = LayerNorm(embed_dim): fused conv + LayerNorm path.
    y_norm = conv_embed_forward(x, weight, bias, gamma, beta, stride=stride, padding=padding)
    jax.block_until_ready(y_norm)
    mu = jnp.mean(y_ref, axis=1, keepdims=True)
    var = jnp.var(y_ref, axis=1, keepdims=True)
    y_ln_ref = ((y_ref - mu) * lax.rsqrt(var + 1e-5)
                * gamma.reshape(1, Cout, 1, 1) + beta.reshape(1, Cout, 1, 1))
    assert y_norm.shape == y_ln_ref.shape
    assert float(jnp.max(jnp.abs(y_norm - y_ln_ref))) < 2e-2

    # 3) Larger map, ragged spatial tiles (HW=144, tm=128), f32 operand path.
    x2 = jax.random.normal(kx2, (B, Cin, 48, 48), jnp.float32)
    y2 = conv_embed_forward(x2, weight, bias, stride=stride, padding=padding,
                            tm=128, matmul_dtype=jnp.float32)
    jax.block_until_ready(y2)
    y2_ref = conv_ref(x2, weight, bias, jnp.float32)
    assert y2.shape == y2_ref.shape
    assert float(jnp.max(jnp.abs(y2 - y2_ref))) < 2e-2

    # 4) Larger map, default bf16 + LayerNorm (auto TM, no batch folding).
    y3 = conv_embed_forward(x2, weight, bias, gamma, beta, stride=stride, padding=padding)
    jax.block_until_ready(y3)
    y3_conv = conv_ref(x2, weight, bias, jnp.bfloat16)
    mu3 = jnp.mean(y3_conv, axis=1, keepdims=True)
    var3 = jnp.var(y3_conv, axis=1, keepdims=True)
    y3_ref = ((y3_conv - mu3) * lax.rsqrt(var3 + 1e-5)
              * gamma.reshape(1, Cout, 1, 1) + beta.reshape(1, Cout, 1, 1))
    assert float(jnp.max(jnp.abs(y3 - y3_ref))) < 2e-2

    print("KERNEL_OK")
</pallas_src>

<mosaic_0001>
module attributes {stable_mosaic.version = 11 : i64} {
  func.func @_convembed_kernel(%arg0: i32, %arg1: i32, %arg2: memref<1x208x32xbf16, #tpu.memory_space<vmem>>, %arg3: memref<32x208xbf16, #tpu.memory_space<vmem>>, %arg4: memref<32x1xf32, #tpu.memory_space<vmem>>, %arg5: memref<32x1xf32, #tpu.memory_space<vmem>>, %arg6: memref<32x1xf32, #tpu.memory_space<vmem>>, %arg7: memref<1x32x32xf32, #tpu.memory_space<vmem>>) attributes {dimension_semantics = [#tpu.dimension_semantics<parallel>, #tpu.dimension_semantics<parallel>], iteration_bounds = array<i64: 1, 1>, scalar_prefetch = 0 : i64, scratch_operands = 0 : i64, tpu.core_type = #tpu.core_type<tc>, window_params = [{transform_indices = @transform_0, window_bounds = array<i64: 1, 208, 32>}, {pipeline_mode = #tpu.pipeline_mode<synchronous>, transform_indices = @transform_1, window_bounds = array<i64: 32, 208>}, {pipeline_mode = #tpu.pipeline_mode<synchronous>, transform_indices = @transform_2, window_bounds = array<i64: 32, 1>}, {pipeline_mode = #tpu.pipeline_mode<synchronous>, transform_indices = @transform_3, window_bounds = array<i64: 32, 1>}, {pipeline_mode = #tpu.pipeline_mode<synchronous>, transform_indices = @transform_4, window_bounds = array<i64: 32, 1>}, {transform_indices = @transform_5, window_bounds = array<i64: 1, 32, 32>}]} {
    %c0 = arith.constant 0 : index
    %c0_0 = arith.constant 0 : index
    %0 = vector.load %arg3[%c0, %c0_0] : memref<32x208xbf16, #tpu.memory_space<vmem>>, vector<32x208xbf16>
    %c0_1 = arith.constant 0 : index
    %c0_2 = arith.constant 0 : index
    %c0_3 = arith.constant 0 : index
    %1 = vector.load %arg2[%c0_1, %c0_2, %c0_3] : memref<1x208x32xbf16, #tpu.memory_space<vmem>>, vector<1x208x32xbf16>
    %2 = vector.shape_cast %1 : vector<1x208x32xbf16> to vector<208x32xbf16>
    %cst = arith.constant dense<0.000000e+00> : vector<32x32xf32>
    %3 = tpu.matmul %0, %2, %cst {dimension_numbers = #tpu.dot_dimension_numbers<[1], [0], [0], [1], [0, 0, 1, 1], [], []>} : vector<32x208xbf16>, vector<208x32xbf16>, vector<32x32xf32> -> vector<32x32xf32>
    %c0_4 = arith.constant 0 : index
    %c0_5 = arith.constant 0 : index
    %4 = vector.load %arg4[%c0_4, %c0_5] : memref<32x1xf32, #tpu.memory_space<vmem>>, vector<32x1xf32>
    %5 = vector.broadcast %4 : vector<32x1xf32> to vector<32x32xf32>
    %6 = arith.addf %3, %5 : vector<32x32xf32>
    %c0_6 = arith.constant 0 : index
    %c0_7 = arith.constant 0 : index
    %c0_8 = arith.constant 0 : index
    %7 = vector.load %arg7[%c0_6, %c0_7, %c0_8] : memref<1x32x32xf32, #tpu.memory_space<vmem>>, vector<1x32x32xf32>
    %8 = vector.shape_cast %7 : vector<1x32x32xf32> to vector<32x32xf32>
    %9 = vector.shape_cast %6 : vector<32x32xf32> to vector<1x32x32xf32>
    tpu.vector_store %arg7[%c0_6, %c0_7, %c0_8], %9 {strides = array<i32>} : memref<1x32x32xf32, #tpu.memory_space<vmem>>, vector<1x32x32xf32>,
    return
  }
  func.func @transform_0(%arg0: i32, %arg1: i32) -> (i32, i32, i32) {
    %c0_i32 = arith.constant 0 : i32
    %c0_i32_0 = arith.constant 0 : i32
    return %arg1, %c0_i32, %arg0 : i32, i32, i32
  }
  func.func @transform_1(%arg0: i32, %arg1: i32) -> (i32, i32) {
    %c0_i32 = arith.constant 0 : i32
    %c0_i32_0 = arith.constant 0 : i32
    %c0_i32_1 = arith.constant 0 : i32
    return %c0_i32, %c0_i32_0 : i32, i32
  }
  func.func @transform_2(%arg0: i32, %arg1: i32) -> (i32, i32) {
    %c0_i32 = arith.constant 0 : i32
    %c0_i32_0 = arith.constant 0 : i32
    %c0_i32_1 = arith.constant 0 : i32
    return %c0_i32, %c0_i32_0 : i32, i32
  }
  func.func @transform_3(%arg0: i32, %arg1: i32) -> (i32, i32) {
    %c0_i32 = arith.constant 0 : i32
    %c0_i32_0 = arith.constant 0 : i32
    %c0_i32_1 = arith.constant 0 : i32
    return %c0_i32, %c0_i32_0 : i32, i32
  }
  func.func @transform_4(%arg0: i32, %arg1: i32) -> (i32, i32) {
    %c0_i32 = arith.constant 0 : i32
    %c0_i32_0 = arith.constant 0 : i32
    %c0_i32_1 = arith.constant 0 : i32
    return %c0_i32, %c0_i32_0 : i32, i32
  }
  func.func @transform_5(%arg0: i32, %arg1: i32) -> (i32, i32, i32) {
    %c0_i32 = arith.constant 0 : i32
    %c0_i32_0 = arith.constant 0 : i32
    return %arg1, %c0_i32, %arg0 : i32, i32, i32
  }
}

</mosaic_0001>

<bundles_post_ra>
// kernel: tpu_custom_call.1
= control target key start
LH: loop header
LB: loop body
LE: loop exit
PB: predicated region body
PF: predicated region fallthrough
CT: control target
= control target key end

     0   :  { %10 = vsyncpa [#allocation3], 0  ;;  %s697_s0 = inlined_call_operand.hbm [shape: bf16[1,208,32], index: 0, kind: input, shape index: {}]   ;;  %s698_s1 = inlined_call_operand.hbm [shape: bf16[32,208], index: 1, kind: input, shape index: {}]   ;;  %s699_s2 = inlined_call_operand.hbm [shape: f32[32,1], index: 2, kind: input, shape index: {}]   ;;  %s700_s3 = inlined_call_operand.hbm [shape: f32[32,1], index: 3, kind: input, shape index: {}]   ;;  %s701_s4 = inlined_call_operand.hbm [shape: f32[32,1], index: 4, kind: input, shape index: {}]   ;;  %s702_s5 = inlined_call_operand.hbm [shape: f32[1,32,32], index: 5, kind: output, shape index: {}]  }
   0x1   :  { %11 = vsyncpa [#allocation6], 0 }
   0x2   :  { %12 = vsyncpa [#allocation9], 0 }
   0x3   :  { %13 = vsyncpa [#allocation4], 0  ;;  %s537_s18 = smov [#allocation5]   ;;  %s397_s22 = scalar_lea.hbm %s698_s1, 512 }
   0x4   :  { %s31_s19 = sshll.u32 %s537_s18, 4  ;;  %p398_p0 = scmp.ne.s32.totalorder %s698_s1, %s397_s22  ;;  %s32_s19 = int_to_ptr.vmem [resolvable:$true] %s31_s19 }
   0x5   :  { %p401_p1 = scmp.lt.u32.totalorder %s397_s22, %s698_s1 }
   0x7   :  { %p403_p2 = pnand %p401_p1, %p398_p0 }
   0x9   :  { %406 = shalt.err (!%p403_p2)
}
   0xa   :  { %s407_s27 = scalar_lea.vmem %s32_s19, 512  ;;  %p412_p4 = scmp.lt.s32.totalorder %s32_s19, %s32_s19 }
   0xb   :  { %p408_p3 = scmp.ne.s32.totalorder %s32_s19, %s407_s27  ;;  %p413_p5 = scmp.lt.s32.totalorder %s407_s27, %s407_s27 }
   0xd   :  { %p414_p6 = por %p413_p5, %p412_p4 }
   0xf   :  { %p415_p7 = pnand %p414_p6, %p408_p3 }
  0x11   :  { %418 = shalt.err (!%p415_p7)
}
  0x12   :  { %s538_s28 = smov 128   ;;  %s539_s29 = smov 8  }
  0x13   :  { %37 = dma.hbm_to_vmem [thread:$0]  %s698_s1, 512, %s32_s19, [#allocation6], %s538_s28, %s538_s28, %s539_s29  }
  0x14   :  { %s540_s7 = smov [#allocation8]   ;;  %s541_s9 = smov [#allocation2]  }
  0x15   :  { %s55_s8 = sshll.u32 %s540_s7, 4  ;;  %s19_s10 = sshll.u32 %s541_s9, 4  ;;  %s56_s8 = int_to_ptr.vmem [resolvable:$true] %s55_s8  ;;  %s20_s10 = int_to_ptr.vmem [resolvable:$true] %s19_s10 }
  0x16   :  { %s419_s13 = scalar_lea.hbm %s700_s3, 512 }
  0x17   :  { %p420_p8 = scmp.ne.s32.totalorder %s700_s3, %s419_s13  ;;  %p423_p9 = scmp.lt.u32.totalorder %s419_s13, %s700_s3 }
  0x19   :  { %p425_p10 = pnand %p423_p9, %p420_p8 }
  0x1b   :  { %428 = shalt.err (!%p425_p10)
}
  0x1c   :  { %s429_s1 = scalar_lea.vmem %s56_s8, 512  ;;  %p434_p12 = scmp.lt.s32.totalorder %s56_s8, %s56_s8 }
  0x1d   :  { %p430_p11 = scmp.ne.s32.totalorder %s56_s8, %s429_s1  ;;  %p435_p13 = scmp.lt.s32.totalorder %s429_s1, %s429_s1 }
  0x1f   :  { %p436_p0 = por %p435_p13, %p434_p12 }
  0x21   :  { %p437_p1 = pnand %p436_p0, %p430_p11 }
  0x23   :  { %440 = shalt.err (!%p437_p1)
}
  0x24   :  { %61 = dma.hbm_to_vmem [thread:$0]  %s700_s3, 512, %s56_s8, [#allocation9], %s538_s28, %s538_s28, %s539_s29  }
  0x25   :  { %s441_s22 = scalar_lea.hbm %s697_s0, 1664 }
  0x26   :  { %p442_p2 = scmp.ne.s32.totalorder %s697_s0, %s441_s22  ;;  %p445_p3 = scmp.lt.u32.totalorder %s441_s22, %s697_s0 }
  0x28   :  { %p447_p4 = pnand %p445_p3, %p442_p2 }
  0x2a   :  { %450 = shalt.err (!%p447_p4)
}
  0x2b   :  { %s451_s27 = scalar_lea.vmem %s20_s10, 1664  ;;  %p456_p6 = scmp.lt.s32.totalorder %s20_s10, %s20_s10 }
  0x2c   :  { %p452_p5 = scmp.ne.s32.totalorder %s20_s10, %s451_s27  ;;  %p457_p7 = scmp.lt.s32.totalorder %s451_s27, %s451_s27 }
  0x2e   :  { %p458_p8 = por %p457_p7, %p456_p6 }
  0x30   :  { %p459_p9 = pnand %p458_p8, %p452_p5 }
  0x32   :  { %462 = shalt.err (!%p459_p9)
}
  0x33   :  { %s542_s3 = smov 64   ;;  %s543_s30 = smov 4  }
  0x34   :  { %25 = dma.hbm_to_vmem [thread:$0]  %s697_s0, 1664, %s20_s10, [#allocation3], %s542_s3, %s542_s3, %s543_s30  }
  0x35   :  { %s544_s8 = smov [#allocation7]   ;;  %s545_s11 = smov [#allocation10]  }
  0x36   :  { %s43_s9 = sshll.u32 %s544_s8, 4  ;;  %s67_s12 = sshll.u32 %s545_s11, 4  ;;  %s44_s9 = int_to_ptr.vmem [resolvable:$true] %s43_s9  ;;  %s68_s12 = int_to_ptr.vmem [resolvable:$true] %s67_s12 }
  0x37   :  { %s463_s15 = scalar_lea.hbm %s699_s2, 512 }
  0x38   :  { %p464_p10 = scmp.ne.s32.totalorder %s699_s2, %s463_s15  ;;  %p467_p11 = scmp.lt.u32.totalorder %s463_s15, %s699_s2 }
  0x3a   :  { %p469_p12 = pnand %p467_p11, %p464_p10 }
  0x3c   :  { %472 = shalt.err (!%p469_p12)
}
  0x3d   :  { %s473_s0 = scalar_lea.vmem %s44_s9, 512  ;;  %p478_p0 = scmp.lt.s32.totalorder %s44_s9, %s44_s9 }
  0x3e   :  { %p474_p13 = scmp.ne.s32.totalorder %s44_s9, %s473_s0  ;;  %p479_p1 = scmp.lt.s32.totalorder %s473_s0, %s473_s0 }
  0x40   :  { %p480_p2 = por %p479_p1, %p478_p0 }
  0x42   :  { %p481_p3 = pnand %p480_p2, %p474_p13 }
  0x44   :  { %484 = shalt.err (!%p481_p3)
}
  0x45   :  { %49 = dma.hbm_to_vmem [thread:$0]  %s699_s2, 512, %s44_s9, [#allocation6], %s538_s28, %s538_s28, %s539_s29  }
  0x46   :  { %s485_s22 = scalar_lea.hbm %s701_s4, 512 }
  0x47   :  { %p486_p4 = scmp.ne.s32.totalorder %s701_s4, %s485_s22  ;;  %p489_p5 = scmp.lt.u32.totalorder %s485_s22, %s701_s4 }
  0x49   :  { %p491_p6 = pnand %p489_p5, %p486_p4 }
  0x4b   :  { %494 = shalt.err (!%p491_p6)
}
  0x4c   :  { %s495_s27 = scalar_lea.vmem %s68_s12, 512  ;;  %p500_p8 = scmp.lt.s32.totalorder %s68_s12, %s68_s12 }
  0x4d   :  { %p496_p7 = scmp.ne.s32.totalorder %s68_s12, %s495_s27  ;;  %p501_p9 = scmp.lt.s32.totalorder %s495_s27, %s495_s27 }
  0x4f   :  { %p502_p10 = por %p501_p9, %p500_p8 }
  0x51   :  { %p503_p11 = pnand %p502_p10, %p496_p7 }
  0x53   :  { %506 = shalt.err (!%p503_p11)
}
  0x54   :  { %73 = dma.hbm_to_vmem [thread:$0]  %s701_s4, 512, %s68_s12, [#allocation9], %s538_s28, %s538_s28, %s539_s29  }
  0x55   :  { %529 = dma.done.wait [#allocation3], 1664  }
  0x56   :  { %530 = vsyncadd [#allocation3], 4294965632 }
  0x57   :  { %531 = dma.done.wait [#allocation6], 1024  }
  0x58   :  { %532 = vsyncadd [#allocation6], 4294966272 }
  0x59   :  { %533 = dma.done.wait [#allocation9], 1024  }
  0x5a   :  { %534 = vsyncadd [#allocation9], 4294966272  ;;  %v546_v0 = vmov 0   ;;  %v378_v1 = vld [vmem:[#allocation2] sm:$0xff]   ;;  %v379_v2 = vld [vmem:[#allocation2 + $0x8] sm:$0xff]   ;;  %vm240_vm0 = vcmask 654336  }
  0x5b   :  { %247 = vmatprep.subr.bf16.mxu0 %v546_v0  ;;  %339 = vmatprep.subr.bf16.mxu1 %v546_v0  ;;  %v380_v3 = vld [vmem:[#allocation2 + $0x10] sm:$0xff]   ;;  %v381_v4 = vld [vmem:[#allocation2 + $0x18] sm:$0xff]   ;;  %v382_v5 = vld [vmem:[#allocation2 + $0x20] sm:$0xff]   ;;  %vm296_vm1 = vcmask 261120   ;;  %s547_s4 = smov [#allocation11]  }
  0x5c   :  { %377 = vset.pattern.permute.xlu1 %v546_v0  ;;  %376 = vset.pattern.permute.xlu0 %v546_v0  ;;  %v393_v6 = vld [vmem:[#allocation5 + $0x4] ss:$8 sps:$4 sm:$0xff]   ;;  %v396_v7 = vld [vmem:[#allocation5 + $0x14] ss:$8 sps:$4 sm:$0xff]   ;;  %v391_v20 = vld [vmem:[#allocation5] ss:$8 sps:$4 sm:$0xff]  }
  0x5d   :  { %248 = vmatpush1.bf16.msra.mxu0 %v378_v1  ;;  %352 = vmatpush1.bf16.msra.mxu1 %v378_v1  ;;  %v122_v8 = vld [vmem:[#allocation7 + $0x10] sm:$0xff]  ;;  %v120_v9 = vld [vmem:[#allocation7] sm:$0xff]  ;;  %v123_v10 = vld [vmem:[#allocation7 + $0x18] sm:$0xff]  ;;  %s306_s30 = sshll.u32 %s547_s4, 4  ;;  %s307_s30 = int_to_ptr.vmem [resolvable:$true] %s306_s30 }
  0x5e   :  { %249 = vmatprep.subr.bf16.mxu0 %v546_v0  ;;  %340 = vmatprep.subr.bf16.mxu1 %v546_v0  ;;  %v383_v11 = vld [vmem:[#allocation2 + $0x28] sm:$0xff]   ;;  %v121_v12 = vld [vmem:[#allocation7 + $0x8] sm:$0xff]  ;;  %v385_v14 = vld [vmem:[#allocation2 + $0x38] sm:$0xff]   ;;  %s507_s6 = scalar_lea.vmem %s307_s30, 512  ;;  %p512_p13 = scmp.lt.s32.totalorder %s307_s30, %s307_s30 }
  0x5f   :  { %337 = vmatprep.mubr.msk.bf16.mxu0 %vm240_vm0, %v393_v6  ;;  %136 = vperm.xlu1 %377, %v122_v8   ;;  %v384_v13 = vld [vmem:[#allocation2 + $0x30] sm:$0xff]   ;;  %v386_v15 = vld [vmem:[#allocation2 + $0x40] sm:$0xff]   ;;  %v387_v16 = vld [vmem:[#allocation2 + $0x48] sm:$0xff]   ;;  %p508_p12 = scmp.ne.s32.totalorder %s307_s30, %s507_s6  ;;  %p513_p0 = scmp.lt.s32.totalorder %s507_s6, %s507_s6 }
  0x60   :  { %338 = vmatprep.mubr.msk.bf16.mxu1 %vm240_vm0, %v396_v7  ;;  %126 = vperm.xlu0 %376, %v120_v9   ;;  %v388_v17 = vld [vmem:[#allocation2 + $0x50] sm:$0xff]   ;;  %v389_v18 = vld [vmem:[#allocation2 + $0x58] sm:$0xff]   ;;  %v390_v19 = vld [vmem:[#allocation2 + $0x60] sm:$0xff]  }
  0x61   :  { %250 = vmatpush1.bf16.msra.mxu0 %v379_v2  ;;  %353 = vmatpush1.bf16.msra.mxu1 %v379_v2  ;;  %v394_v21 = vld [vmem:[#allocation5 + $0x10] ss:$8 sps:$4 sm:$0xff]   ;;  %p514_p1 = por %p513_p0, %p512_p13 }
  0x62   :  { %251 = vmatprep.subr.bf16.mxu0 %v546_v0  ;;  %341 = vmatprep.subr.bf16.mxu1 %v546_v0 }
  0x63   :  { %141 = vperm.xlu1 %377, %v123_v10   ;;  %p515_p2 = pnand %p514_p1, %p508_p12 }
  0x64   :  { %131 = vperm.xlu0 %376, %v121_v12  }
  0x65   :  { %252 = vmatpush1.bf16.msra.mxu0 %v380_v3  ;;  %354 = vmatpush1.bf16.msra.mxu1 %v380_v3 }
  0x66   :  { %253 = vmatprep.subr.bf16.mxu0 %v546_v0  ;;  %342 = vmatprep.subr.bf16.mxu1 %v546_v0 }
  0x69   :  { %254 = vmatpush1.bf16.msra.mxu0 %v381_v4  ;;  %355 = vmatpush1.bf16.msra.mxu1 %v381_v4 }
  0x6a   :  { %255 = vmatprep.subr.bf16.mxu0 %v546_v0  ;;  %343 = vmatprep.subr.bf16.mxu1 %v546_v0 }
  0x6d   :  { %256 = vmatpush1.bf16.msra.mxu0 %v382_v5  ;;  %356 = vmatpush1.bf16.msra.mxu1 %v382_v5 }
  0x6e   :  { %257 = vmatprep.subr.bf16.mxu0 %v546_v0  ;;  %344 = vmatprep.subr.bf16.mxu1 %v546_v0 }
  0x71   :  { %258 = vmatpush1.bf16.msra.mxu0 %v383_v11  ;;  %357 = vmatpush1.bf16.msra.mxu1 %v383_v11 }
  0x72   :  { %259 = vmatprep.subr.bf16.mxu0 %v546_v0  ;;  %345 = vmatprep.subr.bf16.mxu1 %v546_v0 }
  0x75   :  { %260 = vmatpush1.bf16.msra.mxu0 %v384_v13  ;;  %358 = vmatpush1.bf16.msra.mxu1 %v384_v13 }
  0x76   :  { %261 = vmatprep.subr.bf16.mxu0 %v546_v0  ;;  %346 = vmatprep.subr.bf16.mxu1 %v546_v0 }
  0x79   :  { %262 = vmatpush1.bf16.msra.mxu0 %v385_v14  ;;  %359 = vmatpush1.bf16.msra.mxu1 %v385_v14 }
  0x7a   :  { %263 = vmatprep.subr.bf16.mxu0 %v546_v0  ;;  %347 = vmatprep.subr.bf16.mxu1 %v546_v0 }
  0x7d   :  { %264 = vmatpush1.bf16.msra.mxu0 %v386_v15  ;;  %360 = vmatpush1.bf16.msra.mxu1 %v386_v15 }
  0x7e   :  { %265 = vmatprep.subr.bf16.mxu0 %v546_v0  ;;  %348 = vmatprep.subr.bf16.mxu1 %v546_v0 }
  0x81   :  { %266 = vmatpush1.bf16.msra.mxu0 %v387_v16  ;;  %361 = vmatpush1.bf16.msra.mxu1 %v387_v16 }
  0x82   :  { %267 = vmatprep.subr.bf16.mxu0 %v546_v0  ;;  %349 = vmatprep.subr.bf16.mxu1 %v546_v0 }
  0x85   :  { %268 = vmatpush1.bf16.msra.mxu0 %v388_v17  ;;  %362 = vmatpush1.bf16.msra.mxu1 %v388_v17 }
  0x86   :  { %269 = vmatprep.subr.bf16.mxu0 %v546_v0  ;;  %350 = vmatprep.subr.bf16.mxu1 %v546_v0 }
  0x89   :  { %270 = vmatpush1.bf16.msra.mxu0 %v389_v18  ;;  %363 = vmatpush1.bf16.msra.mxu1 %v389_v18 }
  0x8a   :  { %271 = vmatprep.subr.bf16.mxu0 %v546_v0  ;;  %351 = vmatprep.subr.bf16.mxu1 %v546_v0 }
  0x8d   :  { %272 = vmatpush1.bf16.msra.mxu0 %v390_v19  ;;  %364 = vmatpush1.bf16.msra.mxu1 %v390_v19 }
  0x90   :  { %280 = vmatmul.mubr.bf16.vlgmr.msra.gmra.mrb[0].mxu0 %v391_v20  ;;  %288 = vmatmul.mubr.bf16.vlgmr.msra.gmra.mrb[0].mxu1 %v394_v21 }
  0xde   :  { %v137_v22 = vpop.permute.xlu1 %136 }
  0xdf   :  { %v127_v23 = vpop.permute.xlu0 %126 }
  0xe2   :  { %v142_v24 = vpop.permute.xlu1 %141 }
  0xe3   :  { %v132_v25 = vpop.permute.xlu0 %131 }
 0x163   :  { %v281_v26 = vpop.f32.mrb[0].mxu0  ;;  %v289_v27 = vpop.f32.mrb[0].mxu1 }
 0x164   :  { %v282_v28 = vadd.f32 %v281_v26, %v127_v23  ;;  %v290_v29 = vadd.f32 %v289_v27, %v137_v22  ;;  %v283_v30 = vpop.f32.mrb[1].mxu0  ;;  %v291_v31 = vpop.f32.mrb[1].mxu1 }
 0x165   :  { %v284_v32 = vpop.f32.mrb[2].mxu0  ;;  %v292_v33 = vpop.f32.mrb[2].mxu1 }
 0x166   :  { %297 = vst.msk [vmem:[#allocation11] sm:$0xff] %vm296_vm1, %v282_v28  ;;  %299 = vst.msk [vmem:[#allocation11 + $0x10] sm:$0xff] %vm296_vm1, %v290_v29  ;;  %v285_v34 = vadd.f32 %v284_v32, %v132_v25  ;;  %v293_v35 = vadd.f32 %v292_v33, %v142_v24  ;;  %v286_v36 = vpop.f32.mrb[3].mxu0  ;;  %v294_v37 = vpop.f32.mrb[3].mxu1 }
 0x168   :  { %298 = vst.msk [vmem:[#allocation11 + $0x8] sm:$0xff] %vm296_vm1, %v285_v34  ;;  %300 = vst.msk [vmem:[#allocation11 + $0x18] sm:$0xff] %vm296_vm1, %v293_v35 }
 0x169   :  { %518 = shalt.err (!%p515_p2)
}
 0x16a   :  { %s519_s9 = scalar_lea.hbm %s702_s5, 512 }
 0x16b   :  { %p520_p3 = scmp.ne.s32.totalorder %s702_s5, %s519_s9  ;;  %p523_p4 = scmp.lt.u32.totalorder %s519_s9, %s702_s5 }
 0x16d   :  { %p525_p5 = pnand %p523_p4, %p520_p3 }
 0x16f   :  { %528 = shalt.err (!%p525_p5)
}
 0x170   :  { %312 = dma.vmem_to_hbm [thread:$0]  %s307_s30, 512, %s702_s5, [#allocation4], %s538_s28, %s538_s28, %s539_s29  }
 0x171   :  { %535 = dma.done.wait [#allocation4], 512  }
 0x172   :  { %536 = vsyncadd [#allocation4], 4294966784 }
 0x173   :  { %316 = vsyncpa [#allocation3], 1 }
 0x174   :  { %317 = vsyncpa [#allocation6], 1 }
 0x175   :  { %318 = vsyncpa [#allocation9], 1 }
 0x176   :  { %319 = vsyncpa [#allocation4], 1 }

</bundles_post_ra>
